<compile_context>
chip_gen: v7x
topology: tpu7x:2x2x1
jax: 0.10.0
libtpu: 0.0.40
codegen_flags: <defaults>
</compile_context>

<pallas_src>
import math
from functools import partial

import jax
import jax.numpy as jnp
from jax.experimental import pallas as pl
from jax.experimental.pallas import tpu as pltpu


def _l2_margin_kernel(margin_ref, pred_ref, tgt_ref, out_ref, *, rows, tm, lane, sub):
    """One row tile: masked squared error, partially reduced to (sub, lane)."""
    p = pred_ref[...].astype(jnp.float32)
    t = tgt_ref[...].astype(jnp.float32)
    labs = jnp.abs(p - t)
    sq = labs * labs
    margin = margin_ref[0]
    loss = jnp.where(labs < margin, jnp.float32(0.0), sq)

    # Mask rows past the true extent (the ragged last grid block reads padding).
    if rows % tm != 0:
        r0 = pl.program_id(0) * tm
        row_ids = jax.lax.broadcasted_iota(jnp.int32, (tm, lane), 0)
        loss = jnp.where((r0 + row_ids) < rows, loss, jnp.float32(0.0))

    if sub == 8:
        # Layout-preserving split of the sublane axis: VPU-only partial reduce.
        out_ref[...] = loss.reshape(tm // 8, 8, lane).sum(axis=0)
    else:
        # Small-input fallback (tile covers all rows and rows is not a multiple of 8).
        out_ref[...] = loss.sum(axis=0, keepdims=True)


def continuous_loss_l2(pred, target, margin=1.0, *, block_rows=None):
    """Pallas TPU implementation of ContinuousLoss_L2.forward. Returns scalar f32."""
    assert pred.shape == target.shape

    total = int(math.prod(pred.shape))
    p = pred.reshape(-1)
    t = target.reshape(-1)

    # Lane-dense slab: widest lane width (multiple of 128) dividing the element
    # count; otherwise fall back to 128 lanes with a minimal zero pad (padded
    # zeros give labs = 0 -> loss contribution 0 for any margin).
    lane = None
    for cand in (512, 256, 128):
        if total >= cand and total % cand == 0:
            lane = cand
            break
    if lane is None:
        lane = 128
        pad = (-total) % lane
        if pad:
            p = jnp.pad(p, (0, pad))
            t = jnp.pad(t, (0, pad))
    rows = p.shape[0] // lane
    p2 = p.reshape(rows, lane)
    t2 = t.reshape(rows, lane)

    # ~2 MiB f32 per input block: fits 2 inputs x 2 pipeline buffers (~8 MiB)
    # under every generation's scoped-VMEM default (v5e 16 MiB, v6e/v7x 32 MiB).
    if block_rows is None:
        block_rows = max(8, (2 * 1024 * 1024) // (4 * lane))
    tm = min(block_rows, rows)
    if tm < rows:
        tm = max(8, (tm // 8) * 8)  # sublane-aligned tiles when tiling the rows
    sub = 8 if tm % 8 == 0 else 1
    nblocks = -(-rows // tm)

    margin_arr = jnp.full((1,), margin, dtype=jnp.float32)
    kernel = partial(_l2_margin_kernel, rows=rows, tm=tm, lane=lane, sub=sub)

    partials = pl.pallas_call(
        kernel,
        out_shape=jax.ShapeDtypeStruct((nblocks * sub, lane), jnp.float32),
        grid_spec=pltpu.PrefetchScalarGridSpec(
            num_scalar_prefetch=0,
            grid=(nblocks,),
            in_specs=[
                pl.BlockSpec(memory_space=pltpu.MemorySpace.SMEM),  # margin scalar
                pl.BlockSpec((tm, lane), lambda i: (i, 0)),
                pl.BlockSpec((tm, lane), lambda i: (i, 0)),
            ],
            out_specs=pl.BlockSpec((sub, lane), lambda i: (i, 0)),
        ),
        compiler_params=pltpu.CompilerParams(
            dimension_semantics=("parallel",),  # independent blocks: megacore-friendly
            vmem_limit_bytes=32 * 1024 * 1024,
        ),
    )(margin_arr, p2, t2)

    # Tiny final reduction (output is <= ~0.4% of the input bytes).
    return jnp.sum(partials)


if __name__ == "__main__":
    key = jax.random.PRNGKey(0)
    k1, k2, k3, k4 = jax.random.split(key, 4)

    def reference(pred, target, margin):
        labs = jnp.abs(pred - target)
        return jnp.sum(jnp.where(labs < margin, 0.0, labs ** 2))

    # Case 1: small continuous-emotion-style predictions/labels (batch=16, dims=32).
    pred = 2.0 * jax.random.normal(k1, (16, 32), dtype=jnp.float32)
    target = 2.0 * jax.random.normal(k2, (16, 32), dtype=jnp.float32)
    loss = jax.block_until_ready(continuous_loss_l2(pred, target, margin=1.0))
    ref = reference(pred, target, 1.0)
    assert jnp.allclose(loss, ref, rtol=1e-5, atol=1e-5), (loss, ref)

    # Case 2: (batch=50, dims=128) with a small forced tile (block_rows=16) to
    # exercise the multi-block grid, the sublane-aligned VPU partial reduce and
    # the ragged-tail in-kernel mask.
    pred2 = 2.0 * jax.random.normal(k3, (50, 128), dtype=jnp.float32)
    target2 = 2.0 * jax.random.normal(k4, (50, 128), dtype=jnp.float32)
    loss2 = jax.block_until_ready(
        continuous_loss_l2(pred2, target2, margin=0.5, block_rows=16)
    )
    ref2 = reference(pred2, target2, 0.5)
    assert jnp.allclose(loss2, ref2, rtol=1e-5, atol=1e-5), (loss2, ref2)

    print("KERNEL_OK")
</pallas_src>

<mosaic_0001>
module attributes {stable_mosaic.version = 11 : i64} {
  func.func @_l2_margin_kernel(%arg0: i32, %arg1: memref<1xf32, #tpu.memory_space<smem>>, %arg2: memref<1x512xf32, #tpu.memory_space<vmem>>, %arg3: memref<1x512xf32, #tpu.memory_space<vmem>>, %arg4: memref<1x512xf32, #tpu.memory_space<vmem>>) attributes {dimension_semantics = [#tpu.dimension_semantics<parallel>], iteration_bounds = array<i64: 1>, scalar_prefetch = 0 : i64, scratch_operands = 0 : i64, tpu.core_type = #tpu.core_type<tc>, window_params = [{transform_indices = @transform_0, window_bounds = array<i64: 1>}, {transform_indices = @transform_1, window_bounds = array<i64: 1, 512>}, {transform_indices = @transform_2, window_bounds = array<i64: 1, 512>}, {transform_indices = @transform_3, window_bounds = array<i64: 1, 512>}]} {
    %c0 = arith.constant 0 : index
    %c0_0 = arith.constant 0 : index
    %0 = vector.load %arg2[%c0, %c0_0] : memref<1x512xf32, #tpu.memory_space<vmem>>, vector<1x512xf32>
    %c0_1 = arith.constant 0 : index
    %c0_2 = arith.constant 0 : index
    %1 = vector.load %arg3[%c0_1, %c0_2] : memref<1x512xf32, #tpu.memory_space<vmem>>, vector<1x512xf32>
    %2 = arith.subf %0, %1 : vector<1x512xf32>
    %3 = math.absf %2 : vector<1x512xf32>
    %4 = arith.mulf %3, %3 : vector<1x512xf32>
    %c0_3 = arith.constant 0 : index
    %5 = memref.load %arg1[%c0_3] : memref<1xf32, #tpu.memory_space<smem>>
    %6 = vector.broadcast %5 : f32 to vector<1x512xf32>
    %7 = arith.cmpf olt, %3, %6 : vector<1x512xf32>
    %cst = arith.constant 0.000000e+00 : f32
    %8 = vector.broadcast %cst : f32 to vector<1x512xf32>
    %9 = arith.select %7, %8, %4 : vector<1x512xi1>, vector<1x512xf32>
    %cst_4 = arith.constant dense<0.000000e+00> : vector<512xf32>
    %10 = vector.multi_reduction <add>, %9, %cst_4 [0] : vector<1x512xf32> to vector<512xf32>
    %11 = vector.shape_cast %10 : vector<512xf32> to vector<1x512xf32>
    %c0_5 = arith.constant 0 : index
    %c0_6 = arith.constant 0 : index
    %12 = vector.load %arg4[%c0_5, %c0_6] : memref<1x512xf32, #tpu.memory_space<vmem>>, vector<1x512xf32>
    tpu.vector_store %arg4[%c0_5, %c0_6], %11 {strides = array<i32>} : memref<1x512xf32, #tpu.memory_space<vmem>>, vector<1x512xf32>,
    return
  }
  func.func @transform_0(%arg0: i32) -> i32 {
    %c0_i32 = arith.constant 0 : i32
    %c0_i32_0 = arith.constant 0 : i32
    return %c0_i32 : i32
  }
  func.func @transform_1(%arg0: i32) -> (i32, i32) {
    %c0_i32 = arith.constant 0 : i32
    %c0_i32_0 = arith.constant 0 : i32
    return %arg0, %c0_i32 : i32, i32
  }
  func.func @transform_2(%arg0: i32) -> (i32, i32) {
    %c0_i32 = arith.constant 0 : i32
    %c0_i32_0 = arith.constant 0 : i32
    return %arg0, %c0_i32 : i32, i32
  }
  func.func @transform_3(%arg0: i32) -> (i32, i32) {
    %c0_i32 = arith.constant 0 : i32
    %c0_i32_0 = arith.constant 0 : i32
    return %arg0, %c0_i32 : i32, i32
  }
}

</mosaic_0001>

<bundles_post_ra>
// kernel: tpu_custom_call.1
= control target key start
LH: loop header
LB: loop body
LE: loop exit
PB: predicated region body
PF: predicated region fallthrough
CT: control target
= control target key end

     0   :  { %9 = vsyncpa [#allocation4], 0  ;;  %s160_s0 = inlined_call_operand.<no memory space> [shape: f32[1], index: 0, kind: input, shape index: {}]   ;;  %s161_s1 = inlined_call_operand.hbm [shape: f32[1,512], index: 1, kind: input, shape index: {}]   ;;  %s162_s2 = inlined_call_operand.vmem [shape: f32[1,512], index: 2, kind: input, shape index: {}]   ;;  %s163_s3 = inlined_call_operand.hbm [shape: f32[1,512], index: 3, kind: output, shape index: {}]  }
   0x1   :  { %10 = vsyncpa [#allocation5], 0  ;;  %s108_s12 = smov [#allocation3]   ;;  %s60_s16 = scalar_lea.hbm %s161_s1, 64 }
   0x2   :  { %s19_s13 = sshll.u32 %s108_s12, 4  ;;  %p61_p0 = scmp.ne.s32.totalorder %s161_s1, %s60_s16  ;;  %s20_s13 = int_to_ptr.vmem [resolvable:$true] %s19_s13 }
   0x3   :  { %p64_p1 = scmp.lt.u32.totalorder %s60_s16, %s161_s1 }
   0x5   :  { %p66_p2 = pnand %p64_p1, %p61_p0 }
   0x7   :  { %69 = shalt.err (!%p66_p2)
}
   0x8   :  { %s70_s21 = scalar_lea.vmem %s20_s13, 64  ;;  %p75_p4 = scmp.lt.s32.totalorder %s20_s13, %s20_s13 }
   0x9   :  { %p71_p3 = scmp.ne.s32.totalorder %s20_s13, %s70_s21  ;;  %p76_p5 = scmp.lt.s32.totalorder %s70_s21, %s70_s21 }
   0xb   :  { %p77_p6 = por %p76_p5, %p75_p4 }
   0xd   :  { %p78_p7 = pnand %p77_p6, %p71_p3 }
   0xf   :  { %81 = shalt.err (!%p78_p7)
}
  0x10   :  { %22 = dma.hbm_to_vmem [thread:$0]  %s161_s1, 64, %s20_s13, [#allocation4]  }
  0x11   :  { %104 = dma.done.wait [#allocation4], 64  }
  0x12   :  { %105 = vsyncadd [#allocation4], 4294967232  ;;  %v28_v0 = vld [vmem:[#allocation3] sm:$0xf]  ;;  %v38_v3 = vlaneseq  ;;  %v34_v4 = vstv %s160_s0  ;;  %s109_s28 = smov [#allocation6]  }
  0x13   :  { %v29_v1 = vld [vmem:[%s162_s2] sm:$0xf]  ;;  %s49_s29 = sshll.u32 %s109_s28, 4  ;;  %s50_s29 = int_to_ptr.vmem [resolvable:$true] %s49_s29 }
  0x14   :  { %v30_v2 = vsub.f32 %v28_v0, %v29_v1  ;;  %vm40_vm1 = vcmp.lt.s32.totalorder %v38_v3, 512  ;;  %s82_s1 = scalar_lea.vmem %s50_s29, 64  ;;  %p87_p9 = scmp.lt.s32.totalorder %s50_s29, %s50_s29 }
  0x15   :  { %p83_p8 = scmp.ne.s32.totalorder %s50_s29, %s82_s1  ;;  %p88_p10 = scmp.lt.s32.totalorder %s82_s1, %s82_s1 }
  0x16   :  { %v31_v5 = vand.u32 2147483647, %v30_v2 }
  0x17   :  { %p89_p11 = por %p88_p10, %p87_p9 }
  0x18   :  { %v32_v6 = vmul.f32 %v31_v5, %v31_v5  ;;  %vm35_vm0 = vcmp.lt.f32.partialorder %v31_v5, %v34_v4 }
  0x19   :  { %p90_p12 = pnand %p89_p11, %p83_p8 }
  0x1a   :  { %v36_v7 = vsel %vm35_vm0, 0.0, %v32_v6 }
  0x1b   :  { %42 = vst.msk [vmem:[#allocation6] sm:$0xf] %vm40_vm1, %v36_v7 }
  0x1c   :  { %93 = shalt.err (!%p90_p12)
}
  0x1d   :  { %s94_s0 = scalar_lea.hbm %s163_s3, 64 }
  0x1e   :  { %p95_p13 = scmp.ne.s32.totalorder %s163_s3, %s94_s0  ;;  %p98_p0 = scmp.lt.u32.totalorder %s94_s0, %s163_s3 }
  0x20   :  { %p100_p1 = pnand %p98_p0, %p95_p13 }
  0x22   :  { %103 = shalt.err (!%p100_p1)
}
  0x23   :  { %52 = dma.vmem_to_hbm [thread:$0]  %s50_s29, 64, %s163_s3, [#allocation5]  }
  0x24   :  { %106 = dma.done.wait [#allocation5], 64  }
  0x25   :  { %107 = vsyncadd [#allocation5], 4294967232 }
  0x26   :  { %56 = vsyncpa [#allocation4], 1 }
  0x27   :  { %57 = vsyncpa [#allocation5], 1 }

</bundles_post_ra>
